<compile_context>
chip_gen: v7x
topology: tpu7x:2x2x1
jax: 0.10.0
libtpu: 0.0.40
codegen_flags: <defaults>
</compile_context>

<pallas_src>
import jax
import jax.numpy as jnp
from jax.experimental import pallas as pl
from jax.experimental.pallas import tpu as pltpu


def _round_up(x, m):
    return (x + m - 1) // m * m


def _block_vmem_bytes(shape, dtype):
    """Rough padded VMEM footprint of one pipeline buffer holding this block."""
    itemsize = jnp.dtype(dtype).itemsize
    pack = max(1, 4 // itemsize)                      # sub-32-bit packs along sublanes
    rows = _round_up(shape[-2], 8 * pack)
    cols = _round_up(shape[-1], 128)
    lead = 1
    for s in shape[:-2]:
        lead *= s
    return lead * rows * cols * itemsize


def _make_kernel(C, K, M, V):
    def kernel(ids_ref, pts_ref, wf_ref, w1x_ref, b1_ref, w2_ref, b2_ref, out_ref):
        tn = out_ref.shape[0]
        pts = pts_ref[...]                                   # [M, D] bf16 (resident)
        ids = ids_ref[...]                                   # [tn, 1 + C*K] int32
        # Hoisted once (broadcasts are not CSE'd inside loops).
        lane_m = jax.lax.broadcasted_iota(jnp.int32, (tn, M), 1)
        lane_v = jax.lax.broadcasted_iota(jnp.int32, (tn, V), 1)

        # --- in-kernel gather (one-hot MXU matmul) + max over K + sum over C ---
        xyz_sum = None
        for c in range(C):
            max_c = None
            for k in range(K):
                s = 1 + c * K + k
                onehot = (ids[:, s:s + 1] == lane_m).astype(pts.dtype)        # [tn, M]
                g = jnp.dot(onehot, pts, preferred_element_type=jnp.float32)  # [tn, D]
                max_c = g if max_c is None else jnp.maximum(max_c, g)
            xyz_sum = max_c if xyz_sum is None else xyz_sum + max_c           # f32

        # --- Fw MLP: concat(emb, xyz_sum) @ W1 as a split bf16 matmul, with the
        #     embedding gather folded into the [V, H] weight (one-hot @ folded W).
        oh_f = (ids[:, 0:1] == lane_v).astype(wf_ref.dtype)                   # [tn, V]
        h = (jnp.dot(oh_f, wf_ref[...], preferred_element_type=jnp.float32)
             + jnp.dot(xyz_sum.astype(jnp.bfloat16), w1x_ref[...],
                       preferred_element_type=jnp.float32)
             + b1_ref[...])
        h = jnp.maximum(h, 0.0)                                               # ReLU (f32)
        out = (jnp.dot(h.astype(jnp.bfloat16), w2_ref[...],
                       preferred_element_type=jnp.float32) + b2_ref[...])
        out_ref[...] = out.astype(out_ref.dtype)
    return kernel


def input_ly_fasta_forward(lasts_ous_xyz, centroids, fasta, params, *, tile_n=512):
    """lasts_ous_xyz: [1, M, D] f32; centroids: list of [1, N, K] int; fasta: [1, N] int."""
    emb_table = params["emb"]
    w1, b1, w2, b2 = params["w1"], params["b1"], params["w2"], params["b2"]
    V, E = emb_table.shape
    M, D = lasts_ous_xyz.shape[1], lasts_ous_xyz.shape[2]
    N = fasta.shape[1]
    H = w1.shape[1]
    C = len(centroids)
    K = centroids[0].shape[2]

    # ---- glue: index packing / parameter prep (plain JAX, all tiny) ----
    fa = fasta[0].astype(jnp.int32).reshape(N, 1)                            # [N, 1]
    ids = jnp.concatenate(
        [fa] + [c[0].astype(jnp.int32) for c in centroids], axis=1)          # [N, 1+C*K]
    pts = lasts_ous_xyz[0].astype(jnp.bfloat16)                              # [M, D]
    # Fold the 21-row embedding table through the first Linear's top rows.
    wf = (emb_table.astype(jnp.float32)
          @ w1[:E].astype(jnp.float32)).astype(jnp.bfloat16)                 # [V, H]
    w1x = w1[E:].astype(jnp.bfloat16)                                        # [D, H]
    w2b = w2.astype(jnp.bfloat16)                                            # [H, D]
    b1r = b1.reshape(1, H).astype(jnp.float32)
    b2r = b2.reshape(1, D).astype(jnp.float32)

    # ---- tile selection + padding (handles N % tile_n != 0) ----
    if N <= tile_n:
        tn = _round_up(N, 8)
    else:
        tn = _round_up(tile_n, 8)
    n_pad = _round_up(N, tn)
    if n_pad != N:
        ids = jnp.pad(ids, ((0, n_pad - N), (0, 0)))   # index 0 is valid; rows sliced off

    # ---- explicit VMEM budget: double-buffered streams + resident params ----
    stream = 2 * (_block_vmem_bytes((tn, 1 + C * K), jnp.int32)
                  + _block_vmem_bytes((tn, D), jnp.float32))
    resident = 2 * (_block_vmem_bytes((M, D), jnp.bfloat16)
                    + _block_vmem_bytes((V, H), jnp.bfloat16)
                    + _block_vmem_bytes((D, H), jnp.bfloat16)
                    + _block_vmem_bytes((H, D), jnp.bfloat16)
                    + _block_vmem_bytes((1, H), jnp.float32)
                    + _block_vmem_bytes((1, D), jnp.float32))
    vmem_limit = int(min(32 * 1024 * 1024,
                         max(8 * 1024 * 1024, 2 * (stream + resident))))

    out = pl.pallas_call(
        _make_kernel(C, K, M, V),
        out_shape=jax.ShapeDtypeStruct((n_pad, D), jnp.float32),
        grid_spec=pltpu.PrefetchScalarGridSpec(
            num_scalar_prefetch=0,
            grid=(n_pad // tn,),
            in_specs=[
                pl.BlockSpec((tn, 1 + C * K), lambda i: (i, 0)),   # fasta id + indices (streamed)
                pl.BlockSpec((M, D), lambda i: (0, 0)),            # points    (resident)
                pl.BlockSpec((V, H), lambda i: (0, 0)),            # emb_table @ W1[:E]
                pl.BlockSpec((D, H), lambda i: (0, 0)),            # W1[E:]
                pl.BlockSpec((1, H), lambda i: (0, 0)),            # b1
                pl.BlockSpec((H, D), lambda i: (0, 0)),            # W2
                pl.BlockSpec((1, D), lambda i: (0, 0)),            # b2
            ],
            out_specs=pl.BlockSpec((tn, D), lambda i: (i, 0)),
        ),
        compiler_params=pltpu.CompilerParams(
            dimension_semantics=("parallel",),
            vmem_limit_bytes=vmem_limit,
        ),
    )(ids, pts, wf, w1x, b1r, w2b, b2r)
    return out[:N][None]                                        # [1, N, D]


def reference_forward(lasts_ous_xyz, centroids, fasta, params):
    """Pure-JAX f32 reference mirroring the PyTorch forward exactly."""
    emb = params["emb"][fasta[0]]                      # [N, E]
    N, D = fasta.shape[1], lasts_ous_xyz.shape[2]
    acc = jnp.zeros((N, D), jnp.float32)
    for c in centroids:
        g = lasts_ous_xyz[0][c[0]]                     # [N, K, D]
        acc = acc + jnp.max(g, axis=1)                 # [N, D]
    cat = jnp.concatenate([emb, acc], -1)              # [N, E+D]
    h = jnp.maximum(cat @ params["w1"] + params["b1"], 0.0)
    return (h @ params["w2"] + params["b2"])[None]     # [1, N, D]


if __name__ == "__main__":
    # Small shapes consistent with the module.
    E = 16     # ifasta_em_dim
    D = 32     # iem_dims (== lasts_ous_xyz feature dim)
    H = 2 * D  # fmid_dim
    N = 8      # sequence length
    M = 16     # number of points in lasts_ous_xyz
    K = 4      # neighbors per centroid index set
    C = 3      # number of centroid sets

    key = jax.random.PRNGKey(0)
    k_emb, k_w1, k_b1, k_w2, k_b2, k_xyz, k_fa, k_idx = jax.random.split(key, 8)

    params = {
        "emb": jax.random.normal(k_emb, (21, E), jnp.float32) * 0.1,
        "w1": jax.random.normal(k_w1, (E + D, H), jnp.float32) * 0.1,
        "b1": jax.random.normal(k_b1, (H,), jnp.float32) * 0.1,
        "w2": jax.random.normal(k_w2, (H, D), jnp.float32) * 0.1,
        "b2": jax.random.normal(k_b2, (D,), jnp.float32) * 0.1,
    }

    lasts_ous_xyz = jax.random.normal(k_xyz, (1, M, D), jnp.float32)
    fasta = jax.random.randint(k_fa, (1, N), 0, 21, jnp.int32)
    centroids = [
        jax.random.randint(jax.random.fold_in(k_idx, c), (1, N, K), 0, M, jnp.int32)
        for c in range(C)
    ]

    # bf16 matmul operands -> compare against the f32 reference at bf16-level tolerance.
    out = input_ly_fasta_forward(lasts_ous_xyz, centroids, fasta, params)
    out = jax.block_until_ready(out)
    ref = reference_forward(lasts_ous_xyz, centroids, fasta, params)
    assert out.shape == (1, N, D)
    assert jnp.allclose(out, ref, atol=2e-2, rtol=2e-2), "mismatch vs reference (single tile)"

    # Second check: exercise the tiled + padded (N % tile_n != 0) path.
    N2 = 200
    k_fa2, k_idx2 = jax.random.split(jax.random.fold_in(key, 7), 2)
    fasta2 = jax.random.randint(k_fa2, (1, N2), 0, 21, jnp.int32)
    centroids2 = [
        jax.random.randint(jax.random.fold_in(k_idx2, c), (1, N2, K), 0, M, jnp.int32)
        for c in range(C)
    ]
    out2 = jax.block_until_ready(
        input_ly_fasta_forward(lasts_ous_xyz, centroids2, fasta2, params, tile_n=64))
    ref2 = reference_forward(lasts_ous_xyz, centroids2, fasta2, params)
    assert out2.shape == (1, N2, D)
    assert jnp.allclose(out2, ref2, atol=2e-2, rtol=2e-2), "mismatch vs reference (tiled/padded)"

    print("KERNEL_OK")
</pallas_src>

<mosaic_0001>
module attributes {stable_mosaic.version = 11 : i64} {
  func.func @kernel(%arg0: i32, %arg1: memref<8x13xi32, #tpu.memory_space<vmem>>, %arg2: memref<16x32xbf16, #tpu.memory_space<vmem>>, %arg3: memref<21x64xbf16, #tpu.memory_space<vmem>>, %arg4: memref<32x64xbf16, #tpu.memory_space<vmem>>, %arg5: memref<1x64xf32, #tpu.memory_space<vmem>>, %arg6: memref<64x32xbf16, #tpu.memory_space<vmem>>, %arg7: memref<1x32xf32, #tpu.memory_space<vmem>>, %arg8: memref<8x32xf32, #tpu.memory_space<vmem>>) attributes {dimension_semantics = [#tpu.dimension_semantics<parallel>], iteration_bounds = array<i64: 1>, scalar_prefetch = 0 : i64, scratch_operands = 0 : i64, tpu.core_type = #tpu.core_type<tc>, window_params = [{transform_indices = @transform_0, window_bounds = array<i64: 8, 13>}, {pipeline_mode = #tpu.pipeline_mode<synchronous>, transform_indices = @transform_1, window_bounds = array<i64: 16, 32>}, {pipeline_mode = #tpu.pipeline_mode<synchronous>, transform_indices = @transform_2, window_bounds = array<i64: 21, 64>}, {pipeline_mode = #tpu.pipeline_mode<synchronous>, transform_indices = @transform_3, window_bounds = array<i64: 32, 64>}, {pipeline_mode = #tpu.pipeline_mode<synchronous>, transform_indices = @transform_4, window_bounds = array<i64: 1, 64>}, {pipeline_mode = #tpu.pipeline_mode<synchronous>, transform_indices = @transform_5, window_bounds = array<i64: 64, 32>}, {pipeline_mode = #tpu.pipeline_mode<synchronous>, transform_indices = @transform_6, window_bounds = array<i64: 1, 32>}, {transform_indices = @transform_7, window_bounds = array<i64: 8, 32>}]} {
    %c0 = arith.constant 0 : index
    %c0_0 = arith.constant 0 : index
    %0 = vector.load %arg2[%c0, %c0_0] : memref<16x32xbf16, #tpu.memory_space<vmem>>, vector<16x32xbf16>
    %c0_1 = arith.constant 0 : index
    %c0_2 = arith.constant 0 : index
    %1 = vector.load %arg1[%c0_1, %c0_2] : memref<8x13xi32, #tpu.memory_space<vmem>>, vector<8x13xi32>
    %2 = tpu.iota {dimensions = array<i32: 1>} : vector<8x16xi32>
    %3 = tpu.iota {dimensions = array<i32: 1>} : vector<8x21xi32>
    %4 = vector.extract_strided_slice %1 {offsets = [0, 1], sizes = [8, 1], strides = [1, 1]} : vector<8x13xi32> to vector<8x1xi32>
    %5 = vector.broadcast %4 : vector<8x1xi32> to vector<8x16xi32>
    %6 = arith.cmpi eq, %5, %2 : vector<8x16xi32>
    %7 = arith.extui %6 : vector<8x16xi1> to vector<8x16xi32>
    %8 = arith.sitofp %7 : vector<8x16xi32> to vector<8x16xf32>
    %9 = arith.truncf %8 : vector<8x16xf32> to vector<8x16xbf16>
    %cst = arith.constant dense<0.000000e+00> : vector<8x32xf32>
    %10 = tpu.matmul %9, %0, %cst {dimension_numbers = #tpu.dot_dimension_numbers<[1], [0], [0], [1], [0, 0, 1, 1], [], []>} : vector<8x16xbf16>, vector<16x32xbf16>, vector<8x32xf32> -> vector<8x32xf32>
    %11 = vector.extract_strided_slice %1 {offsets = [0, 2], sizes = [8, 1], strides = [1, 1]} : vector<8x13xi32> to vector<8x1xi32>
    %12 = vector.broadcast %11 : vector<8x1xi32> to vector<8x16xi32>
    %13 = arith.cmpi eq, %12, %2 : vector<8x16xi32>
    %14 = arith.extui %13 : vector<8x16xi1> to vector<8x16xi32>
    %15 = arith.sitofp %14 : vector<8x16xi32> to vector<8x16xf32>
    %16 = arith.truncf %15 : vector<8x16xf32> to vector<8x16xbf16>
    %cst_3 = arith.constant dense<0.000000e+00> : vector<8x32xf32>
    %17 = tpu.matmul %16, %0, %cst_3 {dimension_numbers = #tpu.dot_dimension_numbers<[1], [0], [0], [1], [0, 0, 1, 1], [], []>} : vector<8x16xbf16>, vector<16x32xbf16>, vector<8x32xf32> -> vector<8x32xf32>
    %18 = arith.maximumf %10, %17 : vector<8x32xf32>
    %19 = vector.extract_strided_slice %1 {offsets = [0, 3], sizes = [8, 1], strides = [1, 1]} : vector<8x13xi32> to vector<8x1xi32>
    %20 = vector.broadcast %19 : vector<8x1xi32> to vector<8x16xi32>
    %21 = arith.cmpi eq, %20, %2 : vector<8x16xi32>
    %22 = arith.extui %21 : vector<8x16xi1> to vector<8x16xi32>
    %23 = arith.sitofp %22 : vector<8x16xi32> to vector<8x16xf32>
    %24 = arith.truncf %23 : vector<8x16xf32> to vector<8x16xbf16>
    %cst_4 = arith.constant dense<0.000000e+00> : vector<8x32xf32>
    %25 = tpu.matmul %24, %0, %cst_4 {dimension_numbers = #tpu.dot_dimension_numbers<[1], [0], [0], [1], [0, 0, 1, 1], [], []>} : vector<8x16xbf16>, vector<16x32xbf16>, vector<8x32xf32> -> vector<8x32xf32>
    %26 = arith.maximumf %18, %25 : vector<8x32xf32>
    %27 = vector.extract_strided_slice %1 {offsets = [0, 4], sizes = [8, 1], strides = [1, 1]} : vector<8x13xi32> to vector<8x1xi32>
    %28 = vector.broadcast %27 : vector<8x1xi32> to vector<8x16xi32>
    %29 = arith.cmpi eq, %28, %2 : vector<8x16xi32>
    %30 = arith.extui %29 : vector<8x16xi1> to vector<8x16xi32>
    %31 = arith.sitofp %30 : vector<8x16xi32> to vector<8x16xf32>
    %32 = arith.truncf %31 : vector<8x16xf32> to vector<8x16xbf16>
    %cst_5 = arith.constant dense<0.000000e+00> : vector<8x32xf32>
    %33 = tpu.matmul %32, %0, %cst_5 {dimension_numbers = #tpu.dot_dimension_numbers<[1], [0], [0], [1], [0, 0, 1, 1], [], []>} : vector<8x16xbf16>, vector<16x32xbf16>, vector<8x32xf32> -> vector<8x32xf32>
    %34 = arith.maximumf %26, %33 : vector<8x32xf32>
    %35 = vector.extract_strided_slice %1 {offsets = [0, 5], sizes = [8, 1], strides = [1, 1]} : vector<8x13xi32> to vector<8x1xi32>
    %36 = vector.broadcast %35 : vector<8x1xi32> to vector<8x16xi32>
    %37 = arith.cmpi eq, %36, %2 : vector<8x16xi32>
    %38 = arith.extui %37 : vector<8x16xi1> to vector<8x16xi32>
    %39 = arith.sitofp %38 : vector<8x16xi32> to vector<8x16xf32>
    %40 = arith.truncf %39 : vector<8x16xf32> to vector<8x16xbf16>
    %cst_6 = arith.constant dense<0.000000e+00> : vector<8x32xf32>
    %41 = tpu.matmul %40, %0, %cst_6 {dimension_numbers = #tpu.dot_dimension_numbers<[1], [0], [0], [1], [0, 0, 1, 1], [], []>} : vector<8x16xbf16>, vector<16x32xbf16>, vector<8x32xf32> -> vector<8x32xf32>
    %42 = vector.extract_strided_slice %1 {offsets = [0, 6], sizes = [8, 1], strides = [1, 1]} : vector<8x13xi32> to vector<8x1xi32>
    %43 = vector.broadcast %42 : vector<8x1xi32> to vector<8x16xi32>
    %44 = arith.cmpi eq, %43, %2 : vector<8x16xi32>
    %45 = arith.extui %44 : vector<8x16xi1> to vector<8x16xi32>
    %46 = arith.sitofp %45 : vector<8x16xi32> to vector<8x16xf32>
    %47 = arith.truncf %46 : vector<8x16xf32> to vector<8x16xbf16>
    %cst_7 = arith.constant dense<0.000000e+00> : vector<8x32xf32>
    %48 = tpu.matmul %47, %0, %cst_7 {dimension_numbers = #tpu.dot_dimension_numbers<[1], [0], [0], [1], [0, 0, 1, 1], [], []>} : vector<8x16xbf16>, vector<16x32xbf16>, vector<8x32xf32> -> vector<8x32xf32>
    %49 = arith.maximumf %41, %48 : vector<8x32xf32>
    %50 = vector.extract_strided_slice %1 {offsets = [0, 7], sizes = [8, 1], strides = [1, 1]} : vector<8x13xi32> to vector<8x1xi32>
    %51 = vector.broadcast %50 : vector<8x1xi32> to vector<8x16xi32>
    %52 = arith.cmpi eq, %51, %2 : vector<8x16xi32>
    %53 = arith.extui %52 : vector<8x16xi1> to vector<8x16xi32>
    %54 = arith.sitofp %53 : vector<8x16xi32> to vector<8x16xf32>
    %55 = arith.truncf %54 : vector<8x16xf32> to vector<8x16xbf16>
    %cst_8 = arith.constant dense<0.000000e+00> : vector<8x32xf32>
    %56 = tpu.matmul %55, %0, %cst_8 {dimension_numbers = #tpu.dot_dimension_numbers<[1], [0], [0], [1], [0, 0, 1, 1], [], []>} : vector<8x16xbf16>, vector<16x32xbf16>, vector<8x32xf32> -> vector<8x32xf32>
    %57 = arith.maximumf %49, %56 : vector<8x32xf32>
    %58 = vector.extract_strided_slice %1 {offsets = [0, 8], sizes = [8, 1], strides = [1, 1]} : vector<8x13xi32> to vector<8x1xi32>
    %59 = vector.broadcast %58 : vector<8x1xi32> to vector<8x16xi32>
    %60 = arith.cmpi eq, %59, %2 : vector<8x16xi32>
    %61 = arith.extui %60 : vector<8x16xi1> to vector<8x16xi32>
    %62 = arith.sitofp %61 : vector<8x16xi32> to vector<8x16xf32>
    %63 = arith.truncf %62 : vector<8x16xf32> to vector<8x16xbf16>
    %cst_9 = arith.constant dense<0.000000e+00> : vector<8x32xf32>
    %64 = tpu.matmul %63, %0, %cst_9 {dimension_numbers = #tpu.dot_dimension_numbers<[1], [0], [0], [1], [0, 0, 1, 1], [], []>} : vector<8x16xbf16>, vector<16x32xbf16>, vector<8x32xf32> -> vector<8x32xf32>
    %65 = arith.maximumf %57, %64 : vector<8x32xf32>
    %66 = arith.addf %34, %65 : vector<8x32xf32>
    %67 = vector.extract_strided_slice %1 {offsets = [0, 9], sizes = [8, 1], strides = [1, 1]} : vector<8x13xi32> to vector<8x1xi32>
    %68 = vector.broadcast %67 : vector<8x1xi32> to vector<8x16xi32>
    %69 = arith.cmpi eq, %68, %2 : vector<8x16xi32>
    %70 = arith.extui %69 : vector<8x16xi1> to vector<8x16xi32>
    %71 = arith.sitofp %70 : vector<8x16xi32> to vector<8x16xf32>
    %72 = arith.truncf %71 : vector<8x16xf32> to vector<8x16xbf16>
    %cst_10 = arith.constant dense<0.000000e+00> : vector<8x32xf32>
    %73 = tpu.matmul %72, %0, %cst_10 {dimension_numbers = #tpu.dot_dimension_numbers<[1], [0], [0], [1], [0, 0, 1, 1], [], []>} : vector<8x16xbf16>, vector<16x32xbf16>, vector<8x32xf32> -> vector<8x32xf32>
    %74 = vector.extract_strided_slice %1 {offsets = [0, 10], sizes = [8, 1], strides = [1, 1]} : vector<8x13xi32> to vector<8x1xi32>
    %75 = vector.broadcast %74 : vector<8x1xi32> to vector<8x16xi32>
    %76 = arith.cmpi eq, %75, %2 : vector<8x16xi32>
    %77 = arith.extui %76 : vector<8x16xi1> to vector<8x16xi32>
    %78 = arith.sitofp %77 : vector<8x16xi32> to vector<8x16xf32>
    %79 = arith.truncf %78 : vector<8x16xf32> to vector<8x16xbf16>
    %cst_11 = arith.constant dense<0.000000e+00> : vector<8x32xf32>
    %80 = tpu.matmul %79, %0, %cst_11 {dimension_numbers = #tpu.dot_dimension_numbers<[1], [0], [0], [1], [0, 0, 1, 1], [], []>} : vector<8x16xbf16>, vector<16x32xbf16>, vector<8x32xf32> -> vector<8x32xf32>
    %81 = arith.maximumf %73, %80 : vector<8x32xf32>
    %82 = vector.extract_strided_slice %1 {offsets = [0, 11], sizes = [8, 1], strides = [1, 1]} : vector<8x13xi32> to vector<8x1xi32>
    %83 = vector.broadcast %82 : vector<8x1xi32> to vector<8x16xi32>
    %84 = arith.cmpi eq, %83, %2 : vector<8x16xi32>
    %85 = arith.extui %84 : vector<8x16xi1> to vector<8x16xi32>
    %86 = arith.sitofp %85 : vector<8x16xi32> to vector<8x16xf32>
    %87 = arith.truncf %86 : vector<8x16xf32> to vector<8x16xbf16>
    %cst_12 = arith.constant dense<0.000000e+00> : vector<8x32xf32>
    %88 = tpu.matmul %87, %0, %cst_12 {dimension_numbers = #tpu.dot_dimension_numbers<[1], [0], [0], [1], [0, 0, 1, 1], [], []>} : vector<8x16xbf16>, vector<16x32xbf16>, vector<8x32xf32> -> vector<8x32xf32>
    %89 = arith.maximumf %81, %88 : vector<8x32xf32>
    %90 = vector.extract_strided_slice %1 {offsets = [0, 12], sizes = [8, 1], strides = [1, 1]} : vector<8x13xi32> to vector<8x1xi32>
    %91 = vector.broadcast %90 : vector<8x1xi32> to vector<8x16xi32>
    %92 = arith.cmpi eq, %91, %2 : vector<8x16xi32>
    %93 = arith.extui %92 : vector<8x16xi1> to vector<8x16xi32>
    %94 = arith.sitofp %93 : vector<8x16xi32> to vector<8x16xf32>
    %95 = arith.truncf %94 : vector<8x16xf32> to vector<8x16xbf16>
    %cst_13 = arith.constant dense<0.000000e+00> : vector<8x32xf32>
    %96 = tpu.matmul %95, %0, %cst_13 {dimension_numbers = #tpu.dot_dimension_numbers<[1], [0], [0], [1], [0, 0, 1, 1], [], []>} : vector<8x16xbf16>, vector<16x32xbf16>, vector<8x32xf32> -> vector<8x32xf32>
    %97 = arith.maximumf %89, %96 : vector<8x32xf32>
    %98 = arith.addf %66, %97 : vector<8x32xf32>
    %99 = vector.extract_strided_slice %1 {offsets = [0, 0], sizes = [8, 1], strides = [1, 1]} : vector<8x13xi32> to vector<8x1xi32>
    %100 = vector.broadcast %99 : vector<8x1xi32> to vector<8x21xi32>
    %101 = arith.cmpi eq, %100, %3 : vector<8x21xi32>
    %102 = arith.extui %101 : vector<8x21xi1> to vector<8x21xi32>
    %103 = arith.sitofp %102 : vector<8x21xi32> to vector<8x21xf32>
    %104 = arith.truncf %103 : vector<8x21xf32> to vector<8x21xbf16>
    %c0_14 = arith.constant 0 : index
    %c0_15 = arith.constant 0 : index
    %105 = vector.load %arg3[%c0_14, %c0_15] : memref<21x64xbf16, #tpu.memory_space<vmem>>, vector<21x64xbf16>
    %cst_16 = arith.constant dense<0.000000e+00> : vector<8x64xf32>
    %106 = tpu.matmul %104, %105, %cst_16 {dimension_numbers = #tpu.dot_dimension_numbers<[1], [0], [0], [1], [0, 0, 1, 1], [], []>} : vector<8x21xbf16>, vector<21x64xbf16>, vector<8x64xf32> -> vector<8x64xf32>
    %107 = arith.truncf %98 : vector<8x32xf32> to vector<8x32xbf16>
    %c0_17 = arith.constant 0 : index
    %c0_18 = arith.constant 0 : index
    %108 = vector.load %arg4[%c0_17, %c0_18] : memref<32x64xbf16, #tpu.memory_space<vmem>>, vector<32x64xbf16>
    %cst_19 = arith.constant dense<0.000000e+00> : vector<8x64xf32>
    %109 = tpu.matmul %107, %108, %cst_19 {dimension_numbers = #tpu.dot_dimension_numbers<[1], [0], [0], [1], [0, 0, 1, 1], [], []>} : vector<8x32xbf16>, vector<32x64xbf16>, vector<8x64xf32> -> vector<8x64xf32>
    %110 = arith.addf %106, %109 : vector<8x64xf32>
    %c0_20 = arith.constant 0 : index
    %c0_21 = arith.constant 0 : index
    %111 = vector.load %arg5[%c0_20, %c0_21] : memref<1x64xf32, #tpu.memory_space<vmem>>, vector<1x64xf32>
    %112 = vector.broadcast %111 : vector<1x64xf32> to vector<8x64xf32>
    %113 = arith.addf %110, %112 : vector<8x64xf32>
    %cst_22 = arith.constant 0.000000e+00 : f32
    %114 = vector.broadcast %cst_22 : f32 to vector<8x64xf32>
    %115 = arith.maximumf %113, %114 : vector<8x64xf32>
    %116 = arith.truncf %115 : vector<8x64xf32> to vector<8x64xbf16>
    %c0_23 = arith.constant 0 : index
    %c0_24 = arith.constant 0 : index
    %117 = vector.load %arg6[%c0_23, %c0_24] : memref<64x32xbf16, #tpu.memory_space<vmem>>, vector<64x32xbf16>
    %cst_25 = arith.constant dense<0.000000e+00> : vector<8x32xf32>
    %118 = tpu.matmul %116, %117, %cst_25 {dimension_numbers = #tpu.dot_dimension_numbers<[1], [0], [0], [1], [0, 0, 1, 1], [], []>} : vector<8x64xbf16>, vector<64x32xbf16>, vector<8x32xf32> -> vector<8x32xf32>
    %c0_26 = arith.constant 0 : index
    %c0_27 = arith.constant 0 : index
    %119 = vector.load %arg7[%c0_26, %c0_27] : memref<1x32xf32, #tpu.memory_space<vmem>>, vector<1x32xf32>
    %120 = vector.broadcast %119 : vector<1x32xf32> to vector<8x32xf32>
    %121 = arith.addf %118, %120 : vector<8x32xf32>
    %c0_28 = arith.constant 0 : index
    %c0_29 = arith.constant 0 : index
    %122 = vector.load %arg8[%c0_28, %c0_29] : memref<8x32xf32, #tpu.memory_space<vmem>>, vector<8x32xf32>
    tpu.vector_store %arg8[%c0_28, %c0_29], %121 {strides = array<i32>} : memref<8x32xf32, #tpu.memory_space<vmem>>, vector<8x32xf32>,
    return
  }
  func.func @transform_0(%arg0: i32) -> (i32, i32) {
    %c0_i32 = arith.constant 0 : i32
    %c0_i32_0 = arith.constant 0 : i32
    return %arg0, %c0_i32 : i32, i32
  }
  func.func @transform_1(%arg0: i32) -> (i32, i32) {
    %c0_i32 = arith.constant 0 : i32
    %c0_i32_0 = arith.constant 0 : i32
    %c0_i32_1 = arith.constant 0 : i32
    return %c0_i32, %c0_i32_0 : i32, i32
  }
  func.func @transform_2(%arg0: i32) -> (i32, i32) {
    %c0_i32 = arith.constant 0 : i32
    %c0_i32_0 = arith.constant 0 : i32
    %c0_i32_1 = arith.constant 0 : i32
    return %c0_i32, %c0_i32_0 : i32, i32
  }
  func.func @transform_3(%arg0: i32) -> (i32, i32) {
    %c0_i32 = arith.constant 0 : i32
    %c0_i32_0 = arith.constant 0 : i32
    %c0_i32_1 = arith.constant 0 : i32
    return %c0_i32, %c0_i32_0 : i32, i32
  }
  func.func @transform_4(%arg0: i32) -> (i32, i32) {
    %c0_i32 = arith.constant 0 : i32
    %c0_i32_0 = arith.constant 0 : i32
    %c0_i32_1 = arith.constant 0 : i32
    return %c0_i32, %c0_i32_0 : i32, i32
  }
  func.func @transform_5(%arg0: i32) -> (i32, i32) {
    %c0_i32 = arith.constant 0 : i32
    %c0_i32_0 = arith.constant 0 : i32
    %c0_i32_1 = arith.constant 0 : i32
    return %c0_i32, %c0_i32_0 : i32, i32
  }
  func.func @transform_6(%arg0: i32) -> (i32, i32) {
    %c0_i32 = arith.constant 0 : i32
    %c0_i32_0 = arith.constant 0 : i32
    %c0_i32_1 = arith.constant 0 : i32
    return %c0_i32, %c0_i32_0 : i32, i32
  }
  func.func @transform_7(%arg0: i32) -> (i32, i32) {
    %c0_i32 = arith.constant 0 : i32
    %c0_i32_0 = arith.constant 0 : i32
    return %arg0, %c0_i32 : i32, i32
  }
}

</mosaic_0001>

<bundles_post_ra>
// kernel: tpu_custom_call.1
= control target key start
LH: loop header
LB: loop body
LE: loop exit
PB: predicated region body
PF: predicated region fallthrough
CT: control target
= control target key end

     0   :  { %v1128_v1 = vmov 1   ;;  %v1129_v2 = vmov 3   ;;  %v1130_v4 = vmov 0.0   ;;  %vm1131_vm0 = vmmov 0   ;;  %s1339_s0 = inlined_call_operand.vmem [shape: s32[8,13], index: 0, kind: input, shape index: {}]   ;;  %s1340_s1 = inlined_call_operand.vmem [shape: bf16[16,32], index: 1, kind: input, shape index: {}]   ;;  %s1341_s2 = inlined_call_operand.vmem [shape: bf16[21,64], index: 2, kind: input, shape index: {}]   ;;  %s1342_s3 = inlined_call_operand.vmem [shape: bf16[32,64], index: 3, kind: input, shape index: {}]   ;;  %s1343_s4 = inlined_call_operand.vmem [shape: f32[1,64], index: 4, kind: input, shape index: {}]   ;;  %s1344_s5 = inlined_call_operand.vmem [shape: bf16[64,32], index: 5, kind: input, shape index: {}]   ;;  %s1345_s6 = inlined_call_operand.vmem [shape: f32[1,32], index: 6, kind: input, shape index: {}]   ;;  %s1346_s7 = inlined_call_operand.hbm [shape: f32[8,32], index: 7, kind: output, shape index: {}]  }
   0x1   :  { %v30_v0 = vld [vmem:[%s1339_s0] sm:$0xff]  ;;  %1081 = vset.pattern.permute.xlu0 %v1128_v1  ;;  %1083 = vset.pattern.permute.xlu1 %v1129_v2  ;;  %v1132_v5 = vmov 2   ;;  %v1133_v6 = vmov 4  }
   0x2   :  { %34 = vperm.xlu0 %1081, %v30_v0   ;;  %142 = vperm.xlu1 %1083, %v30_v0   ;;  %v1191_v3 = vld [vmem:[%s1340_s1] sm:$0xff]  }
   0x3   :  { %964 = vmatprep.subr.bf16.mxu1 %v1130_v4  ;;  %976 = vmatprep.subr.bf16.mxu0 %v1130_v4 }
   0x4   :  { %965 = vmatpush3.bf16.msra.mxu1 %v1191_v3  ;;  %966 = vmatprep.mubr.msk.bf16.mxu1 %vm1131_vm0, %v1130_v4 }
   0x5   :  { %970 = vmatprep.subr.bf16.mxu1 %v1130_v4  ;;  %977 = vmatpush3.bf16.msra.mxu0 %v1191_v3 }
   0x6   :  { %1082 = vset.pattern.permute.xlu0 %v1132_v5  ;;  %1084 = vset.pattern.permute.xlu1 %v1133_v6 }
   0x7   :  { %91 = vperm.xlu0 %1082, %v30_v0   ;;  %193 = vperm.xlu1 %1084, %v30_v0  }
   0x8   :  { %978 = vmatprep.mubr.msk.bf16.mxu0 %vm1131_vm0, %v1130_v4  ;;  %988 = vmatprep.subr.bf16.mxu0 %v1130_v4 }
   0x9   :  { %12 = vsyncpa [#allocation3], 0  ;;  %v1134_v7 = vmov 5   ;;  %v1135_v8 = vmov 6   ;;  %v1136_v9 = vmov 7   ;;  %v1137_v10 = vmov 9  }
   0xa   :  { %v1138_v11 = vmov 8   ;;  %v1139_v12 = vmov 12   ;;  %v1140_v13 = vmov 10   ;;  %v1141_v14 = vmov 11   ;;  %v1096_v54 = vld [vmem:[%s1341_s2] sm:$0xff]  }
   0xb   :  { %1085 = vset.pattern.permute.xlu1 %v1134_v7  ;;  %1086 = vset.pattern.permute.xlu0 %v1135_v8  ;;  %v1142_v15 = vmov 0   ;;  %v31_v16 = vlaneseq  ;;  %vm46_vm3 = vcmask 130048   ;;  %v1097_v56 = vld [vmem:[%s1342_s3] sm:$0xff]   ;;  %vm735_vm15 = vcmask 1041408  }
   0xc   :  { %244 = vperm.xlu1 %1085, %v30_v0   ;;  %294 = vperm.xlu0 %1086, %v30_v0   ;;  %v1098_v58 = vld [vmem:[%s1341_s2 + $0x8] ss:$0 sps:$4 sm:$0x77]   ;;  %v1143_v59 = vmov 65535  }
   0xd   :  { %v1203_v17 = vand.u32 127, %v31_v16  ;;  %v737_v60 = vsel %vm735_vm15, 4294967295, %v1143_v59 }
  0x10   :  { %1087 = vset.pattern.permute.xlu1 %v1136_v9  ;;  %1089 = vset.pattern.permute.xlu0 %v1137_v10 }
  0x11   :  { %345 = vperm.xlu1 %1087, %v30_v0   ;;  %448 = vperm.xlu0 %1089, %v30_v0  }
  0x15   :  { %1088 = vset.pattern.permute.xlu1 %v1138_v11  ;;  %1092 = vset.pattern.permute.xlu0 %v1139_v12 }
  0x16   :  { %396 = vperm.xlu1 %1088, %v30_v0   ;;  %600 = vperm.xlu0 %1092, %v30_v0  }
  0x1a   :  { %1090 = vset.pattern.permute.xlu1 %v1140_v13  ;;  %1094 = vset.pattern.permute.xlu0 %v1142_v15 }
  0x1b   :  { %498 = vperm.xlu1 %1090, %v30_v0  }
  0x1f   :  { %1091 = vset.pattern.permute.xlu1 %v1141_v14 }
  0x20   :  { %549 = vperm.xlu1 %1091, %v30_v0  }
  0x24   :  { %1093 = vset.pattern.permute.xlu1 %v1142_v15 }
  0x25   :  { %652 = vperm.xlu1 %1093, %v30_v0   ;;  %v1099_v0 = vld [vmem:[%s1342_s3 + $0x8] sm:$0xff]  }
  0x81   :  { %v35_v18 = vpop.permute.xlu0 %34  ;;  %v143_v19 = vpop.permute.xlu1 %142 }
  0x82   :  { %vm36_vm1 = vcmp.eq.s32.totalorder %v35_v18, %v1203_v17  ;;  %vm144_vm2 = vcmp.eq.s32.totalorder %v143_v19, %v1203_v17 }
  0x83   :  { %v890_v20 = vsel %vm36_vm1, 1.0, %v1130_v4  ;;  %v895_v21 = vsel %vm144_vm2, 1.0, %v1130_v4  ;;  %vm736_vm1 = vcmask 1042432   ;;  %vm731_vm2 = vcmask 171008  }
  0x84   :  { %v39_v22 = vpack.c.bf16 %v890_v20, %v890_v20  ;;  %v147_v23 = vpack.c.bf16 %v895_v21, %v895_v21  ;;  %v738_v61 = vsel %vm736_vm1, %v737_v60, 0 }
  0x85   :  { %v740_v62 = vand.u32 %v1098_v58, %v738_v61  ;;  %v1100_v61 = vld [vmem:[%s1344_s5] sm:$0xff]  }
  0x86   :  { %967 = vmatmul.mubr.msk.bf16.vlgmr.msra.gmra.mrb[0].mxu1 %vm46_vm3, %v39_v22  ;;  %v92_v24 = vpop.permute.xlu0 %91  ;;  %v194_v25 = vpop.permute.xlu1 %193  ;;  %979 = vmatmul.mubr.msk.bf16.vlgmr.msra.gmra.mrb[0].mxu0 %vm46_vm3, %v147_v23 }
  0x87   :  { %971 = vmatpush3.bf16.msra.mxu1 %v1191_v3  ;;  %vm93_vm4 = vcmp.eq.s32.totalorder %v92_v24, %v1203_v17  ;;  %972 = vmatprep.mubr.msk.bf16.mxu1 %vm1131_vm0, %v1130_v4  ;;  %vm195_vm5 = vcmp.eq.s32.totalorder %v194_v25, %v1203_v17 }
  0x88   :  { %v893_v26 = vsel %vm93_vm4, 1.0, %v1130_v4  ;;  %982 = vmatprep.subr.bf16.mxu1 %v1130_v4  ;;  %989 = vmatpush3.bf16.msra.mxu0 %v1191_v3  ;;  %v897_v31 = vsel %vm195_vm5, 1.0, %v1130_v4 }
  0x89   :  { %990 = vmatprep.mubr.msk.bf16.mxu0 %vm1131_vm0, %v1130_v4  ;;  %1000 = vmatprep.subr.bf16.mxu0 %v1130_v4  ;;  %v96_v27 = vpack.c.bf16 %v893_v26, %v893_v26  ;;  %v198_v34 = vpack.c.bf16 %v897_v31, %v897_v31 }
  0x8b   :  { %v245_v28 = vpop.permute.xlu1 %244  ;;  %v295_v32 = vpop.permute.xlu0 %294 }
  0x8c   :  { %vm246_vm6 = vcmp.eq.s32.totalorder %v245_v28, %v1203_v17  ;;  %vm296_vm8 = vcmp.eq.s32.totalorder %v295_v32, %v1203_v17 }
  0x8d   :  { %v899_v29 = vsel %vm246_vm6, 1.0, %v1130_v4  ;;  %v901_v39 = vsel %vm296_vm8, 1.0, %v1130_v4 }
  0x8e   :  { %973 = vmatmul.mubr.msk.bf16.vlgmr.msra.gmra.mrb[4].mxu1 %vm46_vm3, %v96_v27  ;;  %v249_v30 = vpack.c.bf16 %v899_v29, %v899_v29  ;;  %v299_v41 = vpack.c.bf16 %v901_v39, %v901_v39 }
  0x8f   :  { %983 = vmatpush3.bf16.msra.mxu1 %v1191_v3  ;;  %984 = vmatprep.mubr.msk.bf16.mxu1 %vm1131_vm0, %v1130_v4 }
  0x90   :  { %994 = vmatprep.subr.bf16.mxu1 %v1130_v4  ;;  %991 = vmatmul.mubr.msk.bf16.vlgmr.msra.gmra.mrb[4].mxu0 %vm46_vm3, %v249_v30  ;;  %v346_v33 = vpop.permute.xlu1 %345  ;;  %v449_v36 = vpop.permute.xlu0 %448 }
  0x91   :  { %vm347_vm7 = vcmp.eq.s32.totalorder %v346_v33, %v1203_v17  ;;  %1001 = vmatpush3.bf16.msra.mxu0 %v1191_v3  ;;  %1002 = vmatprep.mubr.msk.bf16.mxu0 %vm1131_vm0, %v1130_v4  ;;  %vm450_vm9 = vcmp.eq.s32.totalorder %v449_v36, %v1203_v17 }
  0x92   :  { %v903_v35 = vsel %vm347_vm7, 1.0, %v1130_v4  ;;  %1012 = vmatprep.subr.bf16.mxu0 %v1130_v4  ;;  %v907_v40 = vsel %vm450_vm9, 1.0, %v1130_v4 }
  0x93   :  { %v350_v37 = vpack.c.bf16 %v903_v35, %v903_v35  ;;  %v453_v43 = vpack.c.bf16 %v907_v40, %v907_v40 }
  0x95   :  { %v397_v38 = vpop.permute.xlu1 %396  ;;  %v601_v50 = vpop.permute.xlu0 %600 }
  0x96   :  { %985 = vmatmul.mubr.msk.bf16.vlgmr.msra.gmra.mrb[8].mxu1 %vm46_vm3, %v198_v34  ;;  %vm398_vm10 = vcmp.eq.s32.totalorder %v397_v38, %v1203_v17  ;;  %vm602_vm13 = vcmp.eq.s32.totalorder %v601_v50, %v1203_v17 }
  0x97   :  { %995 = vmatpush3.bf16.msra.mxu1 %v1191_v3  ;;  %996 = vmatprep.mubr.msk.bf16.mxu1 %vm1131_vm0, %v1130_v4  ;;  %v905_v44 = vsel %vm398_vm10, 1.0, %v1130_v4  ;;  %v913_v52 = vsel %vm602_vm13, 1.0, %v1130_v4 }
  0x98   :  { %1006 = vmatprep.subr.bf16.mxu1 %v1130_v4  ;;  %1003 = vmatmul.mubr.msk.bf16.vlgmr.msra.gmra.mrb[8].mxu0 %vm46_vm3, %v350_v37  ;;  %v401_v47 = vpack.c.bf16 %v905_v44, %v905_v44  ;;  %v605_v53 = vpack.c.bf16 %v913_v52, %v913_v52 }
  0x99   :  { %1013 = vmatpush3.bf16.msra.mxu0 %v1191_v3  ;;  %1014 = vmatprep.mubr.msk.bf16.mxu0 %vm1131_vm0, %v1130_v4 }
  0x9a   :  { %v499_v42 = vpop.permute.xlu1 %498  ;;  %1024 = vmatprep.subr.bf16.mxu0 %v1130_v4 }
  0x9b   :  { %vm500_vm12 = vcmp.eq.s32.totalorder %v499_v42, %v1203_v17 }
  0x9c   :  { %v909_v49 = vsel %vm500_vm12, 1.0, %v1130_v4 }
  0x9d   :  { %v503_v51 = vpack.c.bf16 %v909_v49, %v909_v49 }
  0x9e   :  { %997 = vmatmul.mubr.msk.bf16.vlgmr.msra.gmra.mrb[12].mxu1 %vm46_vm3, %v299_v41 }
  0x9f   :  { %1007 = vmatpush3.bf16.msra.mxu1 %v1191_v3  ;;  %1008 = vmatprep.mubr.msk.bf16.mxu1 %vm1131_vm0, %v1130_v4  ;;  %v550_v45 = vpop.permute.xlu1 %549 }
  0xa0   :  { %1018 = vmatprep.subr.bf16.mxu1 %v1130_v4  ;;  %1015 = vmatmul.mubr.msk.bf16.vlgmr.msra.gmra.mrb[12].mxu0 %vm46_vm3, %v453_v43  ;;  %vm551_vm11 = vcmp.eq.s32.totalorder %v550_v45, %v1203_v17 }
  0xa1   :  { %v911_v46 = vsel %vm551_vm11, 1.0, %v1130_v4  ;;  %1025 = vmatpush3.bf16.msra.mxu0 %v1191_v3  ;;  %1026 = vmatprep.mubr.msk.bf16.mxu0 %vm1131_vm0, %v1130_v4 }
  0xa2   :  { %1036 = vmatprep.subr.bf16.mxu0 %v1130_v4  ;;  %v554_v48 = vpack.c.bf16 %v911_v46, %v911_v46 }
  0xa4   :  { %v653_v55 = vpop.permute.xlu1 %652 }
  0xa5   :  { %vm654_vm14 = vcmp.eq.s32.totalorder %v653_v55, %v1203_v17 }
  0xa6   :  { %1009 = vmatmul.mubr.msk.bf16.vlgmr.msra.gmra.mrb[16].mxu1 %vm46_vm3, %v401_v47  ;;  %v915_v57 = vsel %vm654_vm14, 1.0, %v1130_v4 }
  0xa7   :  { %1019 = vmatpush3.bf16.msra.mxu1 %v1191_v3  ;;  %1020 = vmatprep.mubr.msk.bf16.mxu1 %vm1131_vm0, %v1130_v4  ;;  %v657_v63 = vpack.c.bf16 %v915_v57, %v915_v57 }
  0xa8   :  { %1030 = vmatprep.subr.bf16.mxu1 %v1130_v4  ;;  %1027 = vmatmul.mubr.msk.bf16.vlgmr.msra.gmra.mrb[16].mxu0 %vm46_vm3, %v554_v48 }
  0xa9   :  { %1040 = vmatprep.mubr.msk.bf16.mxu0 %vm1131_vm0, %v1130_v4  ;;  %1037 = vmatpush3.bf16.msra.mxu0 %v1097_v56 }
  0xaa   :  { %1038 = vmatprep.subr.bf16.mxu0 %v1130_v4 }
  0xad   :  { %1039 = vmatpush3.bf16.msra.mxu0 %v1099_v0 }
  0xae   :  { %1021 = vmatmul.mubr.msk.bf16.vlgmr.msra.gmra.mrb[20].mxu1 %vm46_vm3, %v503_v51  ;;  %1052 = vmatprep.subr.bf16.mxu0 %v1130_v4 }
  0xaf   :  { %1031 = vmatpush3.bf16.msra.mxu1 %v1191_v3  ;;  %1032 = vmatprep.mubr.msk.bf16.mxu1 %vm1131_vm0, %v1130_v4 }
  0xb0   :  { %1044 = vmatprep.subr.bf16.mxu1 %v1130_v4 }
  0xb6   :  { %1033 = vmatmul.mubr.msk.bf16.vlgmr.msra.gmra.mrb[24].mxu1 %vm46_vm3, %v605_v53  ;;  %vm678_vm3 = vcmask 261120  }
  0xb7   :  { %1048 = vmatprep.mubr.msk.bf16.mxu1 %vm1131_vm0, %v1130_v4  ;;  %1045 = vmatpush3.bf16.msra.mxu1 %v1096_v54 }
  0xb8   :  { %1046 = vmatprep.subr.bf16.mxu1 %v1130_v4 }
  0xbb   :  { %1047 = vmatpush3.bf16.msra.mxu1 %v740_v62 }
  0xbe   :  { %1049 = vmatmul.mubr.msk.bf16.vlgmr.msra.gmra.mrb[28].mxu1 %vm731_vm2, %v657_v63  ;;  %v1101_v63 = vld [vmem:[%s1344_s5 + $0x8] sm:$0xff]  }
 0x159   :  { %v84_v1 = vpop.f32.mrb[0].mxu1  ;;  %v185_v2 = vpop.f32.mrb[0].mxu0 }
 0x15a   :  { %v968_v3 = vpop.f32.mrb[1].mxu1  ;;  %v980_v5 = vpop.f32.mrb[1].mxu0 }
 0x15b   :  { %v87_v6 = vpop.f32.mrb[2].mxu1  ;;  %v188_v7 = vpop.f32.mrb[2].mxu0  ;;  %v1102_v5 = vld [vmem:[%s1344_s5 + $0x10] sm:$0xff]  }
 0x15c   :  { %v969_v8 = vpop.f32.mrb[3].mxu1  ;;  %v981_v9 = vpop.f32.mrb[3].mxu0  ;;  %v1103_v6 = vld [vmem:[%s1344_s5 + $0x18] sm:$0xff]   ;;  %s1144_s5 = smov [#allocation2]  }
 0x15d   :  { %v922_v8 = vld [vmem:[%s1343_s4] ss:$0 sm:$0xff]  ;;  %s882_s21 = sshll.u32 %s1144_s5, 4  ;;  %s883_s21 = int_to_ptr.vmem [resolvable:$true] %s882_s21 }
 0x15e   :  { %s1104_s4 = scalar_lea.vmem %s883_s21, 128  ;;  %p1109_p1 = scmp.lt.s32.totalorder %s883_s21, %s883_s21 }
 0x15f   :  { %p1105_p0 = scmp.ne.s32.totalorder %s883_s21, %s1104_s4  ;;  %p1110_p2 = scmp.lt.s32.totalorder %s1104_s4, %s1104_s4 }
 0x161   :  { %v134_v10 = vpop.f32.mrb[4].mxu1  ;;  %p1111_p3 = por %p1110_p2, %p1109_p1 }
 0x162   :  { %v140_v11 = vmax.f32 %v84_v1, %v134_v10  ;;  %v974_v12 = vpop.f32.mrb[5].mxu1 }
 0x163   :  { %v137_v13 = vpop.f32.mrb[6].mxu1  ;;  %v287_v14 = vpop.f32.mrb[4].mxu0  ;;  %p1112_p4 = pnand %p1111_p3, %p1105_p0 }
 0x164   :  { %v191_v15 = vmax.f32 %v140_v11, %v185_v2  ;;  %v975_v16 = vpop.f32.mrb[7].mxu1  ;;  %v992_v17 = vpop.f32.mrb[5].mxu0 }
 0x165   :  { %v290_v18 = vpop.f32.mrb[6].mxu0 }
 0x166   :  { %v993_v19 = vpop.f32.mrb[7].mxu0 }
 0x169   :  { %v236_v20 = vpop.f32.mrb[8].mxu1 }
 0x16a   :  { %v242_v21 = vmax.f32 %v191_v15, %v236_v20  ;;  %v986_v22 = vpop.f32.mrb[9].mxu1 }
 0x16b   :  { %v239_v23 = vpop.f32.mrb[10].mxu1  ;;  %v388_v24 = vpop.f32.mrb[8].mxu0 }
 0x16c   :  { %v987_v25 = vpop.f32.mrb[11].mxu1  ;;  %v1004_v26 = vpop.f32.mrb[9].mxu0 }
 0x16d   :  { %v391_v27 = vpop.f32.mrb[10].mxu0 }
 0x16e   :  { %v1005_v28 = vpop.f32.mrb[11].mxu0 }
 0x171   :  { %v337_v29 = vpop.f32.mrb[12].mxu1 }
 0x172   :  { %v343_v30 = vmax.f32 %v287_v14, %v337_v29  ;;  %v998_v31 = vpop.f32.mrb[13].mxu1 }
 0x173   :  { %v340_v32 = vpop.f32.mrb[14].mxu1  ;;  %v491_v33 = vpop.f32.mrb[12].mxu0 }
 0x174   :  { %v394_v34 = vmax.f32 %v343_v30, %v388_v24  ;;  %v999_v35 = vpop.f32.mrb[15].mxu1  ;;  %v1016_v36 = vpop.f32.mrb[13].mxu0 }
 0x175   :  { %v494_v37 = vpop.f32.mrb[14].mxu0 }
 0x176   :  { %v1017_v38 = vpop.f32.mrb[15].mxu0 }
 0x179   :  { %v439_v39 = vpop.f32.mrb[16].mxu1 }
 0x17a   :  { %v445_v40 = vmax.f32 %v394_v34, %v439_v39  ;;  %v1010_v41 = vpop.f32.mrb[17].mxu1 }
 0x17b   :  { %v442_v42 = vpop.f32.mrb[18].mxu1  ;;  %v592_v43 = vpop.f32.mrb[16].mxu0 }
 0x17c   :  { %v446_v44 = vadd.f32 %v445_v40, %v242_v21  ;;  %v1011_v45 = vpop.f32.mrb[19].mxu1  ;;  %v1028_v46 = vpop.f32.mrb[17].mxu0 }
 0x17d   :  { %v595_v47 = vpop.f32.mrb[18].mxu0 }
 0x17e   :  { %v1029_v48 = vpop.f32.mrb[19].mxu0 }
 0x181   :  { %v541_v49 = vpop.f32.mrb[20].mxu1 }
 0x182   :  { %v547_v50 = vmax.f32 %v491_v33, %v541_v49  ;;  %v1022_v51 = vpop.f32.mrb[21].mxu1 }
 0x183   :  { %v544_v52 = vpop.f32.mrb[22].mxu1 }
 0x184   :  { %v598_v53 = vmax.f32 %v547_v50, %v592_v43  ;;  %v1023_v54 = vpop.f32.mrb[23].mxu1 }
 0x189   :  { %v643_v55 = vpop.f32.mrb[24].mxu1 }
 0x18a   :  { %v649_v56 = vmax.f32 %v598_v53, %v643_v55  ;;  %v1034_v57 = vpop.f32.mrb[25].mxu1 }
 0x18b   :  { %v646_v58 = vpop.f32.mrb[26].mxu1 }
 0x18c   :  { %v650_v59 = vadd.f32 %v649_v56, %v446_v44  ;;  %v1035_v60 = vpop.f32.mrb[27].mxu1 }
 0x18e   :  { %v661_v62 = vpack.c.bf16 %v650_v59, %v650_v59 }
 0x190   :  { %1041 = vmatmul.mubr.msk.bf16.vlgmr.msra.gmra.mrb[20].mxu0 %vm678_vm3, %v661_v62 }
 0x191   :  { %1053 = vmatpush3.bf16.msra.mxu0 %v1100_v61  ;;  %1060 = vmatprep.mubr.msk.bf16.mxu0 %vm1131_vm0, %v1130_v4  ;;  %v776_v0 = vpop.f32.mrb[28].mxu1  ;;  %vm831_vm0 = vcmask 523264  }
 0x192   :  { %1054 = vmatprep.subr.bf16.mxu0 %v1130_v4  ;;  %v1050_v1 = vpop.f32.mrb[29].mxu1 }
 0x193   :  { %v779_v2 = vpop.f32.mrb[30].mxu1 }
 0x194   :  { %v1051_v3 = vpop.f32.mrb[31].mxu1 }
 0x195   :  { %1055 = vmatpush3.bf16.msra.mxu0 %v1101_v63 }
 0x196   :  { %1056 = vmatprep.subr.bf16.mxu0 %v1130_v4 }
 0x199   :  { %1057 = vmatpush3.bf16.msra.mxu0 %v1102_v5 }
 0x19a   :  { %1058 = vmatprep.subr.bf16.mxu0 %v1130_v4  ;;  %v923_v4 = vld [vmem:[%s1345_s6] ss:$0 sm:$0xff] }
 0x19d   :  { %1059 = vmatpush3.bf16.msra.mxu0 %v1103_v6 }
 0x263   :  { %v716_v7 = vpop.f32.mrb[20].mxu0 }
 0x264   :  { %v777_v9 = vadd.f32 %v776_v0, %v716_v7  ;;  %v1042_v10 = vpop.f32.mrb[21].mxu0 }
 0x265   :  { %v719_v11 = vpop.f32.mrb[22].mxu0 }
 0x266   :  { %v789_v12 = vadd.f32 %v922_v8, %v777_v9  ;;  %v1043_v13 = vpop.f32.mrb[23].mxu0 }
 0x268   :  { %v790_v14 = vmax.f32 %v789_v12, 0.0 }
 0x26a   :  { %v791_v15 = vpack.c.bf16 %v790_v14, %v790_v14 }
 0x26c   :  { %1061 = vmatmul.mubr.msk.bf16.vlgmr.msra.gmra.mrb[24].mxu0 %vm831_vm0, %v791_v15 }
 0x33f   :  { %v869_v16 = vpop.f32.mrb[24].mxu0 }
 0x340   :  { %v870_v17 = vadd.f32 %v923_v4, %v869_v16  ;;  %v1062_v18 = vpop.f32.mrb[25].mxu0 }
 0x341   :  { %v872_v19 = vpop.f32.mrb[26].mxu0 }
 0x342   :  { %875 = vst.msk [vmem:[#allocation2] sm:$0xff] %vm678_vm3, %v870_v17  ;;  %v1063_v20 = vpop.f32.mrb[27].mxu0 }
 0x343   :  { %1115 = shalt.err (!%p1112_p4)
}
 0x344   :  { %s1116_s6 = scalar_lea.hbm %s1346_s7, 128 }
 0x345   :  { %p1117_p5 = scmp.ne.s32.totalorder %s1346_s7, %s1116_s6  ;;  %p1120_p6 = scmp.lt.u32.totalorder %s1116_s6, %s1346_s7 }
 0x347   :  { %p1122_p7 = pnand %p1120_p6, %p1117_p5 }
 0x349   :  { %1125 = shalt.err (!%p1122_p7)
}
 0x34a   :  { %885 = dma.vmem_to_hbm [thread:$0]  %s883_s21, 128, %s1346_s7, [#allocation3]  }
 0x34b   :  { %1126 = dma.done.wait [#allocation3], 128  }
 0x34c   :  { %1127 = vsyncadd [#allocation3], 4294967168 }
 0x34d   :  { %889 = vsyncpa [#allocation3], 1 }

</bundles_post_ra>
